<compile_context>
chip_gen: v5e
topology: v5e:2x2
jax: 0.10.0
libtpu: 0.0.40
codegen_flags: <defaults>
</compile_context>

<pallas_src>
import functools

import jax
import jax.numpy as jnp
from jax.experimental import pallas as pl
from jax.experimental.pallas import tpu as pltpu

LANE = 128


def _round_up(v: int, m: int) -> int:
    return ((v + m - 1) // m) * m


def _pad_to(a, shape):
    pads = [(0, s - d) for d, s in zip(a.shape, shape)]
    if all(p == (0, 0) for p in pads):
        return a
    return jnp.pad(a, pads)


def init_mlp_params(key, h_dims):
    """Deterministic init mirroring torch.nn.Linear; weights stored as [in, out]."""
    params = []
    for d_in, d_out in zip(h_dims[:-1], h_dims[1:]):
        key, kw, kb = jax.random.split(key, 3)
        bound = 1.0 / jnp.sqrt(jnp.float32(d_in))
        w_t = jax.random.uniform(kw, (d_in, d_out), jnp.float32, -bound, bound)
        b = jax.random.uniform(kb, (d_out,), jnp.float32, -bound, bound)
        params.append((w_t, b))
    return params


def prepare_params(params):
    """One-time prep: pad the *internal* feature dims to the 128-lane boundary,
    cast weights to bf16 (MXU inputs), keep biases in f32 (added on the f32
    accumulator).  The first in-dim stays un-padded to match un-padded x and
    the last out-dim stays un-padded to match the un-padded output array."""
    n_layers = len(params)
    prepared = []
    for li, (w_t, b) in enumerate(params):
        d_in, d_out = w_t.shape
        d_in_p = d_in if li == 0 else _round_up(d_in, LANE)
        d_out_p = d_out if li == n_layers - 1 else _round_up(d_out, LANE)
        w_p = _pad_to(w_t, (d_in_p, d_out_p)).astype(jnp.bfloat16)
        b_p = _pad_to(b.reshape(1, -1), (1, d_out_p)).astype(jnp.float32)
        prepared.append((w_p, b_p))
    return prepared


def _fused_mlp_kernel(*refs, n_layers: int):
    # refs = (x_ref, w0_ref, b0_ref, w1_ref, b1_ref, ..., o_ref)
    x_ref, o_ref = refs[0], refs[-1]
    p_refs = refs[1:-1]

    h = x_ref[...].astype(jnp.bfloat16)              # bf16 into the MXU
    for li in range(n_layers):
        w_ref = p_refs[2 * li]
        b_ref = p_refs[2 * li + 1]
        acc = jnp.dot(h, w_ref[...], preferred_element_type=jnp.float32)
        acc = acc + b_ref[...]                       # bias-add in f32
        if li != n_layers - 1:
            h = jnp.maximum(acc, 0.0).astype(jnp.bfloat16)  # ReLU (f32) -> bf16
        else:
            o_ref[...] = acc.astype(o_ref.dtype)
    # TODO(synk): for hidden dims >~2K, tile each layer's output columns
    # (fori_loop over 512-col chunks into a VMEM scratch) to avoid vreg spills.


def mlp_forward(prepared_params, x, *, block_n=None):
    """Fused MLP forward: one pallas_call for the whole Linear(+ReLU) stack."""
    n, d0 = x.shape
    n_layers = len(prepared_params)
    assert prepared_params[0][0].shape[0] == d0, "x feature dim mismatch"
    d_last = prepared_params[-1][0].shape[1]
    out_dtype = x.dtype

    if block_n is None:
        # 256 amortizes grid overhead while fitting v7x VMEM; v5e/v6e users with
        # very large N can pass block_n=512.
        block_n = min(256, _round_up(n, 8))
    grid_n = pl.cdiv(n, block_n)

    resident = pl.Buffered(1)  # weights/biases never change across the grid
    flat_inputs = [x]
    in_specs = [pl.BlockSpec((block_n, d0), lambda i: (i, 0))]
    for (w_p, b_p) in prepared_params:
        flat_inputs += [w_p, b_p]
        in_specs += [
            pl.BlockSpec(w_p.shape, lambda i: (0, 0), pipeline_mode=resident),
            pl.BlockSpec(b_p.shape, lambda i: (0, 0), pipeline_mode=resident),
        ]

    # VMEM budget: resident params (single-buffered) + double-buffered x/out
    # tiles + in-flight intermediates, with headroom; clamped to safe limits.
    param_bytes = sum(w.size * w.dtype.itemsize + b.size * b.dtype.itemsize
                      for w, b in prepared_params)
    max_feat = max([d0, d_last] + [w.shape[1] for w, _ in prepared_params])
    io_bytes = (2 * block_n * d0 * x.dtype.itemsize
                + 2 * block_n * d_last * jnp.dtype(out_dtype).itemsize)
    act_bytes = 3 * block_n * max_feat * 4
    vmem_limit = int(min(64 * 2 ** 20,
                         max(32 * 2 ** 20,
                             2 * (param_bytes + io_bytes + act_bytes) + 8 * 2 ** 20)))

    flops = 2 * n * sum(w.shape[0] * w.shape[1] for w, _ in prepared_params)
    bytes_accessed = (x.size * x.dtype.itemsize + param_bytes
                      + n * d_last * jnp.dtype(out_dtype).itemsize)

    kernel = functools.partial(_fused_mlp_kernel, n_layers=n_layers)
    return pl.pallas_call(
        kernel,
        out_shape=jax.ShapeDtypeStruct((n, d_last), out_dtype),
        grid=(grid_n,),
        in_specs=in_specs,
        out_specs=pl.BlockSpec((block_n, d_last), lambda i: (i, 0)),
        compiler_params=pltpu.CompilerParams(
            dimension_semantics=("parallel",),
            vmem_limit_bytes=vmem_limit),
        cost_estimate=pl.CostEstimate(
            flops=flops, transcendentals=0, bytes_accessed=bytes_accessed),
    )(*flat_inputs)


if __name__ == "__main__":
    # MLP: 32 -> 64 -> 48 -> 16, ReLU between hidden layers, no final activation
    # (end_activation=False, batch_norm=False defaults of the PyTorch module).
    h_dims = [32, 64, 48, 16]
    batch = 8

    key = jax.random.PRNGKey(0)
    key_x, key_p = jax.random.split(key)
    x = jax.random.normal(key_x, (batch, h_dims[0]), jnp.float32)
    params = init_mlp_params(key_p, h_dims)
    prepared = prepare_params(params)           # one-time pad + bf16 cast

    fwd = jax.jit(mlp_forward)
    out = jax.block_until_ready(fwd(prepared, x))

    # Plain-JAX f32 reference (kernel matmuls run in bf16 -> loose tolerance).
    ref = x
    for i, (w_t, b) in enumerate(params):
        ref = ref @ w_t + b
        if i != len(params) - 1:
            ref = jnp.maximum(ref, 0.0)
    assert out.shape == (batch, h_dims[-1])
    assert jnp.allclose(out, ref, atol=3e-2, rtol=3e-2), float(jnp.max(jnp.abs(out - ref)))

    print("KERNEL_OK")
</pallas_src>

<mosaic_0001>
module attributes {stable_mosaic.version = 11 : i64} {
  func.func @_fused_mlp_kernel(%arg0: i32, %arg1: memref<8x32xf32, #tpu.memory_space<vmem>>, %arg2: memref<32x128xbf16, #tpu.memory_space<vmem>>, %arg3: memref<1x128xf32, #tpu.memory_space<vmem>>, %arg4: memref<128x128xbf16, #tpu.memory_space<vmem>>, %arg5: memref<1x128xf32, #tpu.memory_space<vmem>>, %arg6: memref<128x16xbf16, #tpu.memory_space<vmem>>, %arg7: memref<1x16xf32, #tpu.memory_space<vmem>>, %arg8: memref<8x16xf32, #tpu.memory_space<vmem>>) attributes {dimension_semantics = [#tpu.dimension_semantics<parallel>], iteration_bounds = array<i64: 1>, scalar_prefetch = 0 : i64, scratch_operands = 0 : i64, tpu.core_type = #tpu.core_type<tc>, window_params = [{transform_indices = @transform_0, window_bounds = array<i64: 8, 32>}, {pipeline_mode = #tpu.pipeline_mode<synchronous>, transform_indices = @transform_1, window_bounds = array<i64: 32, 128>}, {pipeline_mode = #tpu.pipeline_mode<synchronous>, transform_indices = @transform_2, window_bounds = array<i64: 1, 128>}, {pipeline_mode = #tpu.pipeline_mode<synchronous>, transform_indices = @transform_3, window_bounds = array<i64: 128, 128>}, {pipeline_mode = #tpu.pipeline_mode<synchronous>, transform_indices = @transform_4, window_bounds = array<i64: 1, 128>}, {pipeline_mode = #tpu.pipeline_mode<synchronous>, transform_indices = @transform_5, window_bounds = array<i64: 128, 16>}, {pipeline_mode = #tpu.pipeline_mode<synchronous>, transform_indices = @transform_6, window_bounds = array<i64: 1, 16>}, {transform_indices = @transform_7, window_bounds = array<i64: 8, 16>}]} {
    %c0 = arith.constant 0 : index
    %c0_0 = arith.constant 0 : index
    %0 = vector.load %arg1[%c0, %c0_0] : memref<8x32xf32, #tpu.memory_space<vmem>>, vector<8x32xf32>
    %1 = arith.truncf %0 : vector<8x32xf32> to vector<8x32xbf16>
    %c0_1 = arith.constant 0 : index
    %c0_2 = arith.constant 0 : index
    %2 = vector.load %arg2[%c0_1, %c0_2] : memref<32x128xbf16, #tpu.memory_space<vmem>>, vector<32x128xbf16>
    %cst = arith.constant dense<0.000000e+00> : vector<8x128xf32>
    %3 = tpu.matmul %1, %2, %cst {dimension_numbers = #tpu.dot_dimension_numbers<[1], [0], [0], [1], [0, 0, 1, 1], [], []>} : vector<8x32xbf16>, vector<32x128xbf16>, vector<8x128xf32> -> vector<8x128xf32>
    %c0_3 = arith.constant 0 : index
    %c0_4 = arith.constant 0 : index
    %4 = vector.load %arg3[%c0_3, %c0_4] : memref<1x128xf32, #tpu.memory_space<vmem>>, vector<1x128xf32>
    %5 = vector.broadcast %4 : vector<1x128xf32> to vector<8x128xf32>
    %6 = arith.addf %3, %5 : vector<8x128xf32>
    %cst_5 = arith.constant 0.000000e+00 : f32
    %7 = vector.broadcast %cst_5 : f32 to vector<8x128xf32>
    %8 = arith.maximumf %6, %7 : vector<8x128xf32>
    %9 = arith.truncf %8 : vector<8x128xf32> to vector<8x128xbf16>
    %c0_6 = arith.constant 0 : index
    %c0_7 = arith.constant 0 : index
    %10 = vector.load %arg4[%c0_6, %c0_7] : memref<128x128xbf16, #tpu.memory_space<vmem>>, vector<128x128xbf16>
    %cst_8 = arith.constant dense<0.000000e+00> : vector<8x128xf32>
    %11 = tpu.matmul %9, %10, %cst_8 {dimension_numbers = #tpu.dot_dimension_numbers<[1], [0], [0], [1], [0, 0, 1, 1], [], []>} : vector<8x128xbf16>, vector<128x128xbf16>, vector<8x128xf32> -> vector<8x128xf32>
    %c0_9 = arith.constant 0 : index
    %c0_10 = arith.constant 0 : index
    %12 = vector.load %arg5[%c0_9, %c0_10] : memref<1x128xf32, #tpu.memory_space<vmem>>, vector<1x128xf32>
    %13 = vector.broadcast %12 : vector<1x128xf32> to vector<8x128xf32>
    %14 = arith.addf %11, %13 : vector<8x128xf32>
    %cst_11 = arith.constant 0.000000e+00 : f32
    %15 = vector.broadcast %cst_11 : f32 to vector<8x128xf32>
    %16 = arith.maximumf %14, %15 : vector<8x128xf32>
    %17 = arith.truncf %16 : vector<8x128xf32> to vector<8x128xbf16>
    %c0_12 = arith.constant 0 : index
    %c0_13 = arith.constant 0 : index
    %18 = vector.load %arg6[%c0_12, %c0_13] : memref<128x16xbf16, #tpu.memory_space<vmem>>, vector<128x16xbf16>
    %cst_14 = arith.constant dense<0.000000e+00> : vector<8x16xf32>
    %19 = tpu.matmul %17, %18, %cst_14 {dimension_numbers = #tpu.dot_dimension_numbers<[1], [0], [0], [1], [0, 0, 1, 1], [], []>} : vector<8x128xbf16>, vector<128x16xbf16>, vector<8x16xf32> -> vector<8x16xf32>
    %c0_15 = arith.constant 0 : index
    %c0_16 = arith.constant 0 : index
    %20 = vector.load %arg7[%c0_15, %c0_16] : memref<1x16xf32, #tpu.memory_space<vmem>>, vector<1x16xf32>
    %21 = vector.broadcast %20 : vector<1x16xf32> to vector<8x16xf32>
    %22 = arith.addf %19, %21 : vector<8x16xf32>
    %c0_17 = arith.constant 0 : index
    %c0_18 = arith.constant 0 : index
    %23 = vector.load %arg8[%c0_17, %c0_18] : memref<8x16xf32, #tpu.memory_space<vmem>>, vector<8x16xf32>
    tpu.vector_store %arg8[%c0_17, %c0_18], %22 {strides = array<i32>} : memref<8x16xf32, #tpu.memory_space<vmem>>, vector<8x16xf32>,
    return
  }
  func.func @transform_0(%arg0: i32) -> (i32, i32) {
    %c0_i32 = arith.constant 0 : i32
    %c0_i32_0 = arith.constant 0 : i32
    return %arg0, %c0_i32 : i32, i32
  }
  func.func @transform_1(%arg0: i32) -> (i32, i32) {
    %c0_i32 = arith.constant 0 : i32
    %c0_i32_0 = arith.constant 0 : i32
    %c0_i32_1 = arith.constant 0 : i32
    return %c0_i32, %c0_i32_0 : i32, i32
  }
  func.func @transform_2(%arg0: i32) -> (i32, i32) {
    %c0_i32 = arith.constant 0 : i32
    %c0_i32_0 = arith.constant 0 : i32
    %c0_i32_1 = arith.constant 0 : i32
    return %c0_i32, %c0_i32_0 : i32, i32
  }
  func.func @transform_3(%arg0: i32) -> (i32, i32) {
    %c0_i32 = arith.constant 0 : i32
    %c0_i32_0 = arith.constant 0 : i32
    %c0_i32_1 = arith.constant 0 : i32
    return %c0_i32, %c0_i32_0 : i32, i32
  }
  func.func @transform_4(%arg0: i32) -> (i32, i32) {
    %c0_i32 = arith.constant 0 : i32
    %c0_i32_0 = arith.constant 0 : i32
    %c0_i32_1 = arith.constant 0 : i32
    return %c0_i32, %c0_i32_0 : i32, i32
  }
  func.func @transform_5(%arg0: i32) -> (i32, i32) {
    %c0_i32 = arith.constant 0 : i32
    %c0_i32_0 = arith.constant 0 : i32
    %c0_i32_1 = arith.constant 0 : i32
    return %c0_i32, %c0_i32_0 : i32, i32
  }
  func.func @transform_6(%arg0: i32) -> (i32, i32) {
    %c0_i32 = arith.constant 0 : i32
    %c0_i32_0 = arith.constant 0 : i32
    %c0_i32_1 = arith.constant 0 : i32
    return %c0_i32, %c0_i32_0 : i32, i32
  }
  func.func @transform_7(%arg0: i32) -> (i32, i32) {
    %c0_i32 = arith.constant 0 : i32
    %c0_i32_0 = arith.constant 0 : i32
    return %arg0, %c0_i32 : i32, i32
  }
}

</mosaic_0001>

<bundles_post_ra>
// kernel: mlp_forward.1
= control target key start
LH: loop header
LB: loop body
LE: loop exit
PB: predicated region body
PF: predicated region fallthrough
CT: control target
= control target key end

     0   :  { %12 = vsyncpa [#allocation3], 0  ;;  %s528_s0 = inlined_call_operand.vmem [shape: f32[8,32], index: 0, kind: input, shape index: {}]   ;;  %s529_s1 = inlined_call_operand.hbm [shape: bf16[32,128], index: 1, kind: input, shape index: {}]   ;;  %s530_s2 = inlined_call_operand.vmem [shape: f32[1,128], index: 2, kind: input, shape index: {}]   ;;  %s531_s3 = inlined_call_operand.vmem [shape: bf16[128,128], index: 3, kind: input, shape index: {}]   ;;  %s532_s4 = inlined_call_operand.vmem [shape: f32[1,128], index: 4, kind: input, shape index: {}]   ;;  %s533_s5 = inlined_call_operand.vmem [shape: bf16[128,16], index: 5, kind: input, shape index: {}]   ;;  %s534_s6 = inlined_call_operand.vmem [shape: f32[1,16], index: 6, kind: input, shape index: {}]   ;;  %s535_s7 = inlined_call_operand.hbm [shape: f32[8,16], index: 7, kind: output, shape index: {}]  }
   0x1   :  { %13 = vsyncpa [#allocation4], 0  ;;  %s20_s26 = sshll.u32 %s529_s1, 4  ;;  %s418_s27 = smov [#allocation2]   ;;  %s21_s26 = int_to_ptr.hbm [resolvable:$true] %s20_s26 }
   0x2   :  { %s22_s28 = sshll.u32 %s418_s27, 4  ;;  %s419_s29 = smov 64   ;;  %s23_s28 = int_to_ptr.vmem [resolvable:$true] %s22_s28 }
   0x3   :  { %s420_s30 = smov 4  }
   0x4   :  { %28 = dma.hbm_to_vmem [thread:$0]  %s21_s26, 256, %s23_s28, [#allocation3], %s419_s29, %s419_s29, %s420_s30  }
   0x5   :  { %414 = dma.done.wait [#allocation3], 256  }
   0x6   :  { %415 = vsyncadd [#allocation3], 4294967040  ;;  %v342_v0 = vld [vmem:[#allocation2 + $0x8] sm:$0xff]  ;;  %v350_v1 = vld [vmem:[%s531_s3 + $0x38] sm:$0xff]  ;;  %vm66_vm0 = vcmask 261120   ;;  %s421_s19 = smov [#allocation5]  }
   0x7   :  { %76 = vmatpush.bf16.msra.mxu0 %v342_v0  ;;  %v341_v2 = vld [vmem:[#allocation2] sm:$0xff]  ;;  %153 = vmatpush.bf16.msra.mxu1 %v350_v1  ;;  %v349_v4 = vld [vmem:[%s531_s3 + $0x30] sm:$0xff]  ;;  %v348_v6 = vld [vmem:[%s531_s3 + $0x28] sm:$0xff]  ;;  %s256_s20 = sshll.u32 %s421_s19, 4  ;;  %vm249_vm1 = vcmask 130048   ;;  %s257_s20 = int_to_ptr.vmem [resolvable:$true] %s256_s20 }
   0x8   :  { %v44_v3 = vld [vmem:[%s528_s0] sm:$0xff]  ;;  %v346_v8 = vld [vmem:[%s531_s3 + $0x18] sm:$0xff]  ;;  %v345_v9 = vld [vmem:[%s531_s3 + $0x10] sm:$0xff] }
   0x9   :  { %v45_v5 = vpack.c.bf16 %v44_v3, %v44_v3  ;;  %v347_v7 = vld [vmem:[%s531_s3 + $0x20] sm:$0xff]  ;;  %v344_v10 = vld [vmem:[%s531_s3 + $0x8] sm:$0xff]  ;;  %v358_v12 = vld [vmem:[%s533_s5 + $0x38] sm:$0xff] }
   0xa   :  { %v343_v11 = vld [vmem:[%s531_s3] sm:$0xff]  ;;  %236 = vmatpush.bf16.msra.mxu2 %v358_v12  ;;  %v357_v13 = vld [vmem:[%s533_s5 + $0x30] sm:$0xff]  ;;  %v356_v14 = vld [vmem:[%s533_s5 + $0x28] sm:$0xff] }
   0xb   :  { %77 = vmatpush.bf16.msra.mxu0 %v341_v2  ;;  %154 = vmatpush.bf16.msra.mxu1 %v349_v4  ;;  %v355_v15 = vld [vmem:[%s533_s5 + $0x20] sm:$0xff]  ;;  %v354_v16 = vld [vmem:[%s533_s5 + $0x18] sm:$0xff]  ;;  %v353_v17 = vld [vmem:[%s533_s5 + $0x10] sm:$0xff] }
   0xc   :  { %v363_v18 = vld [vmem:[%s530_s2] ss:$0 sm:$0xff]  ;;  %v352_v24 = vld [vmem:[%s533_s5 + $0x8] sm:$0xff] }
   0xd   :  { %v351_v25 = vld [vmem:[%s533_s5] sm:$0xff]  ;;  %s258_s5 = sshll.u32 %s535_s7, 4  ;;  %s259_s5 = int_to_ptr.hbm [resolvable:$true] %s258_s5 }
   0xe   :  { %276 = vmatmul.msk.bf16.vlgmr.msra.gmra.mxu0 %vm66_vm0, %v45_v5  ;;  %237 = vmatpush.bf16.msra.mxu2 %v357_v13  ;;  %v364_v26 = vld [vmem:[%s532_s4] ss:$0 sm:$0xff] }
   0xf   :  { %155 = vmatpush.bf16.msra.mxu1 %v348_v6  ;;  %v365_v32 = vld [vmem:[%s534_s6] ss:$0 sm:$0xff] }
  0x12   :  { %238 = vmatpush.bf16.msra.mxu2 %v356_v14 }
  0x13   :  { %156 = vmatpush.bf16.msra.mxu1 %v347_v7 }
  0x16   :  { %239 = vmatpush.bf16.msra.mxu2 %v355_v15 }
  0x17   :  { %157 = vmatpush.bf16.msra.mxu1 %v346_v8 }
  0x1a   :  { %240 = vmatpush.bf16.msra.mxu2 %v354_v16 }
  0x1b   :  { %158 = vmatpush.bf16.msra.mxu1 %v345_v9 }
  0x1e   :  { %241 = vmatpush.bf16.msra.mxu2 %v353_v17 }
  0x1f   :  { %159 = vmatpush.bf16.msra.mxu1 %v344_v10 }
  0x22   :  { %242 = vmatpush.bf16.msra.mxu2 %v352_v24 }
  0x23   :  { %160 = vmatpush.bf16.msra.mxu1 %v343_v11 }
  0x26   :  { %243 = vmatpush.bf16.msra.mxu2 %v351_v25 }
  0x8b   :  { %v79_v19 = vpop.f32.mrf.mxu0 }
  0x8c   :  { %v80_v20 = vadd.f32 %v363_v18, %v79_v19 }
  0x8e   :  { %v83_v21 = vmax.f32 %v80_v20, 0.0 }
  0x90   :  { %v84_v22 = vpack.c.bf16 %v83_v21, %v83_v21 }
  0x92   :  { %161 = vmatmul.bf16.vlgmr.msra.gmra.mxu1 %v84_v22 }
  0x93   :  { %v81_v23 = vpop.f32.mrf.mxu0 }
 0x10f   :  { %v162_v27 = vpop.f32.mrf.mxu1 }
 0x110   :  { %v163_v28 = vadd.f32 %v364_v26, %v162_v27 }
 0x112   :  { %v166_v29 = vmax.f32 %v163_v28, 0.0 }
 0x114   :  { %v167_v30 = vpack.c.bf16 %v166_v29, %v166_v29 }
 0x116   :  { %244 = vmatmul.bf16.vlgmr.msra.gmra.mxu2 %v167_v30 }
 0x117   :  { %v164_v31 = vpop.f32.mrf.mxu1 }
 0x199   :  { %v245_v33 = vpop.f32.mrf.mxu2 }
 0x19a   :  { %v246_v34 = vadd.f32 %v365_v32, %v245_v33 }
 0x19c   :  { %250 = vst.msk [vmem:[#allocation5] sm:$0xff] %vm249_vm1, %v246_v34 }
 0x19d   :  { %261 = dma.vmem_to_hbm [thread:$0]  %s257_s20, 128, %s259_s5, [#allocation4]  }
 0x1a1   :  { %v247_v35 = vpop.f32.mrf.mxu2 }
 0x1a2   :  { %416 = dma.done.wait [#allocation4], 128  }
 0x1a3   :  { %417 = vsyncadd [#allocation4], 4294967168 }
 0x1a4   :  { %266 = vsyncpa [#allocation3], 1 }
 0x1a5   :  { %267 = vsyncpa [#allocation4], 1 }

</bundles_post_ra>
